<compile_context>
chip_gen: v6e
topology: v6e:2x2x1
jax: 0.10.0
libtpu: 0.0.40
codegen_flags: <defaults>
</compile_context>

<pallas_src>
import functools

import jax
import jax.numpy as jnp
from jax.experimental import pallas as pl
from jax.experimental.pallas import tpu as pltpu


_LANE = 128
_NODE_PAD = 256   # pad N to a multiple of this -> >= 2 row tiles of 128


def _round_up(x, m):
    return ((x + m - 1) // m) * m


def _pick_tile(n_pad, candidates, min_tiles=1):
    for t in candidates:
        if t <= n_pad and n_pad % t == 0 and n_pad // t >= min_tiles:
            return t
    return candidates[-1]   # 128 always divides n_pad (multiple of 256)


@functools.lru_cache(maxsize=1)
def _vmem_budget():
    """Per-TensorCore VMEM budget with headroom.

    ~100 MiB on v5e/v6e (128 MiB VMEM), ~50 MiB on v7x (64 MiB/TC). Falls back
    to the conservative 64 MiB assumption if the query is unavailable.
    """
    cap = 64 << 20
    try:
        cap = int(pltpu.get_tpu_info().vmem_capacity_bytes)
    except Exception:
        pass
    return int(cap * 0.78)


# --------------------------------------------------------------------------
# Kernels
# --------------------------------------------------------------------------
def _agg_kernel(a_ref, h_ref, inv_ref, *rest, apply_relu, fuse_proj,
                h_resident, tile_k):
    """K-tiled aggregation:  out = ((A+I) @ h) * invdeg [@ Wᵀ] + b, opt. relu.

    a_ref  : (tile_n, tile_k) int8     binary (A+I) tile, widened to bf16 here
    h_ref  : (n_pad, F) bf16 (resident) or (tile_k, F) bf16 (streamed K-slab)
    inv_ref: (tile_n, 1) f32           1 / (deg + 1)
    wt_ref : (F, F_out) bf16           [only when fuse_proj]
    b_ref  : (1, F_out) f32
    o_ref  : (tile_n, F_out)           written at last K step
    acc_ref: (tile_n, F) f32           aggregation accumulator (scratch)
    """
    if fuse_proj:
        wt_ref, b_ref, o_ref, acc_ref = rest
    else:
        b_ref, o_ref, acc_ref = rest

    k = pl.program_id(1)

    @pl.when(k == 0)
    def _():
        acc_ref[...] = jnp.zeros_like(acc_ref)

    a = a_ref[...].astype(jnp.bfloat16)     # int8 0/1 -> bf16 (exact), VPU slot
    if h_resident:
        start = pl.multiple_of(k * tile_k, tile_k)
        h_blk = h_ref[pl.ds(start, tile_k), :]
    else:
        h_blk = h_ref[...]
    acc_ref[...] += jnp.dot(a, h_blk, preferred_element_type=jnp.float32)

    @pl.when(k == pl.num_programs(1) - 1)
    def _():
        agg = acc_ref[...] * inv_ref[...]          # exact f32 normalization
        if fuse_proj:
            out = jnp.dot(agg.astype(jnp.bfloat16), wt_ref[...],
                          preferred_element_type=jnp.float32) + b_ref[...]
        else:
            out = agg + b_ref[...]
        if apply_relu:
            out = jnp.maximum(out, 0.0)
        o_ref[...] = out.astype(o_ref.dtype)


def _linear_kernel(x_ref, wt_ref, o_ref):
    """Row-tiled projection: o = x @ Wᵀ (bf16 inputs, f32 accumulate)."""
    o_ref[...] = jnp.dot(x_ref[...], wt_ref[...],
                         preferred_element_type=jnp.float32).astype(o_ref.dtype)


# --------------------------------------------------------------------------
# Wrappers
# --------------------------------------------------------------------------
def _linear_project(h, wt, *, tile_n):
    """(N_pad, F_in) bf16 @ (F_in, F_out) bf16 -> (N_pad, F_out) bf16."""
    n_pad, f_in = h.shape
    f_out = wt.shape[1]
    grid_spec = pltpu.PrefetchScalarGridSpec(
        num_scalar_prefetch=0,
        grid=(n_pad // tile_n,),
        in_specs=[
            pl.BlockSpec((tile_n, f_in), lambda i: (i, 0)),
            pl.BlockSpec((f_in, f_out), lambda i: (0, 0)),
        ],
        out_specs=pl.BlockSpec((tile_n, f_out), lambda i: (i, 0)),
    )
    return pl.pallas_call(
        _linear_kernel,
        out_shape=jax.ShapeDtypeStruct((n_pad, f_out), jnp.bfloat16),
        grid_spec=grid_spec,
        compiler_params=pltpu.CompilerParams(
            dimension_semantics=("parallel",),
            vmem_limit_bytes=_vmem_budget()),
        cost_estimate=pl.CostEstimate(
            flops=2 * n_pad * f_in * f_out,
            transcendentals=0,
            bytes_accessed=(n_pad * f_in * 2 + f_in * f_out * 2
                            + n_pad * f_out * 2)),
    )(h, wt)


def _aggregate(a_bin, h, invdeg, wt, b, *, apply_relu, out_dtype, tile_n,
               tile_k, force_stream=False):
    """out = ((A+I) @ h) * invdeg [@ Wᵀ] + b, optional relu.

    wt=None -> features are already projected (project-first path).
    """
    n_pad = a_bin.shape[0]
    f_h = h.shape[1]
    f_out = b.shape[1]
    out_isz = jnp.dtype(out_dtype).itemsize
    budget = _vmem_budget()

    # VMEM footprint estimate (double-buffered inputs/outputs, f32 accumulator,
    # in-kernel bf16 widen temp, lane-padded invdeg tile).
    fixed = (2 * tile_n * tile_k * 1                         # Â int8
             + tile_n * tile_k * 2                           # widen temp
             + 2 * tile_n * _LANE * 4                        # invdeg tile
             + (2 * f_h * f_out * 2 if wt is not None else 0)
             + 2 * 8 * f_out * 4                             # bias
             + tile_n * f_h * 4                              # accumulator
             + 2 * tile_n * f_out * out_isz)                 # output
    resident_bytes = fixed + 2 * n_pad * f_h * 2
    h_resident = (not force_stream) and (resident_bytes + (4 << 20) <= budget)

    grid = (n_pad // tile_n, n_pad // tile_k)

    in_specs = [pl.BlockSpec((tile_n, tile_k), lambda i, k: (i, k))]   # Â tile
    if h_resident:
        # Whole feature matrix resident in VMEM; block index never changes so
        # it is DMA'd once (no per-row-tile re-stream).
        in_specs.append(pl.BlockSpec((n_pad, f_h), lambda i, k: (0, 0)))
    else:
        in_specs.append(pl.BlockSpec((tile_k, f_h), lambda i, k: (k, 0)))
    in_specs.append(pl.BlockSpec((tile_n, 1), lambda i, k: (i, 0)))    # invdeg
    args = [a_bin, h, invdeg]
    if wt is not None:
        in_specs.append(pl.BlockSpec((f_h, f_out), lambda i, k: (0, 0)))
        args.append(wt)
    in_specs.append(pl.BlockSpec((1, f_out), lambda i, k: (0, 0)))     # bias
    args.append(b)

    kernel = functools.partial(_agg_kernel, apply_relu=apply_relu,
                               fuse_proj=wt is not None,
                               h_resident=h_resident, tile_k=tile_k)

    flops = 2 * n_pad * n_pad * f_h
    if wt is not None:
        flops += 2 * n_pad * f_h * f_out
    h_bytes = (n_pad * f_h * 2 if h_resident
               else (n_pad // tile_n) * n_pad * f_h * 2)
    bytes_accessed = (n_pad * n_pad                 # Â int8 stream (dominant)
                      + h_bytes
                      + n_pad * f_out * out_isz
                      + n_pad * 4)

    grid_spec = pltpu.PrefetchScalarGridSpec(
        num_scalar_prefetch=0,
        grid=grid,
        in_specs=in_specs,
        out_specs=pl.BlockSpec((tile_n, f_out), lambda i, k: (i, 0)),
        scratch_shapes=[pltpu.VMEM((tile_n, f_h), jnp.float32)],
    )
    return pl.pallas_call(
        kernel,
        out_shape=jax.ShapeDtypeStruct((n_pad, f_out), out_dtype),
        grid_spec=grid_spec,
        compiler_params=pltpu.CompilerParams(
            dimension_semantics=("parallel", "arbitrary"),
            vmem_limit_bytes=budget),
        cost_estimate=pl.CostEstimate(
            flops=flops, transcendentals=0, bytes_accessed=bytes_accessed),
    )(*args)


def sage_conv_gcn(a_bin, invdeg, h, w_pad, b_pad, *, apply_relu, out_dtype,
                  tile_n, tile_k, tile_lin, force_stream=False):
    """One DGL SAGEConv('gcn') layer: fc_neigh((A@h + h)/(deg+1)) + bias.

    a_bin  : (N_pad, N_pad) int8  binary adjacency with self loops (A + I)
    invdeg : (N_pad, 1) f32       1 / (deg + 1)
    h      : (N_pad, F_in_pad) bf16
    w_pad  : (F_out_pad, F_in_pad) f32   fc_neigh weight (PyTorch convention)
    b_pad  : (F_out_pad,) f32            fc_neigh bias
    """
    f_in = h.shape[1]
    f_out = w_pad.shape[0]
    wt = jnp.transpose(w_pad).astype(jnp.bfloat16)        # (F_in_pad, F_out_pad)
    b2 = b_pad.reshape(1, f_out).astype(jnp.float32)
    if f_out < f_in:
        # Project first: ((A+I) @ (h Wᵀ)) * invdeg + b == ((A+I) @ h) * invdeg Wᵀ + b,
        # but the big N² aggregation matmul runs at width F_out instead of F_in.
        hp = _linear_project(h, wt, tile_n=tile_lin)
        return _aggregate(a_bin, hp, invdeg, None, b2, apply_relu=apply_relu,
                          out_dtype=out_dtype, tile_n=tile_n, tile_k=tile_k,
                          force_stream=force_stream)
    return _aggregate(a_bin, h, invdeg, wt, b2, apply_relu=apply_relu,
                      out_dtype=out_dtype, tile_n=tile_n, tile_k=tile_k,
                      force_stream=force_stream)


def init_sage_params(key, in_feats, n_hidden, n_classes, n_layers):
    """Deterministic parameter init matching SAGE.__init__ layer sizing."""
    dims = []
    if n_layers > 1:
        dims.append((in_feats, n_hidden))
        for _ in range(n_layers - 1):
            dims.append((n_hidden, n_hidden))
    else:
        dims.append((in_feats, n_classes))

    params = []
    for (fi, fo) in dims:
        key, kw, kb = jax.random.split(key, 3)
        scale = 1.0 / jnp.sqrt(jnp.float32(fi))
        w = jax.random.uniform(kw, (fo, fi), jnp.float32, -scale, scale)
        b = jax.random.uniform(kb, (fo,), jnp.float32, -scale, scale)
        params.append((w, b))
    return params


def sage_forward(adj, x, params, *, tile_n=None, tile_k=None,
                 force_stream=False):
    """Full SAGE.forward_smc (eval mode): stacked SAGEConv('gcn') + relu."""
    n = x.shape[0]
    n_pad = _round_up(n, _NODE_PAD)
    if tile_n is None:
        tile_n = _pick_tile(n_pad, (512, 256, 128), min_tiles=2)
    if tile_k is None:
        tile_k = _pick_tile(n_pad, (2048, 1024, 512, 256, 128))
    tile_lin = _pick_tile(n_pad, (1024, 512, 256, 128), min_tiles=2)
    assert n_pad % tile_n == 0 and n_pad % tile_k == 0

    # ---- graph preprocessing, hoisted out of the layer loop (once per fwd) --
    # Binary (A + I) stays exact in int8 (1 byte/elem); the 1/(deg+1) scale is
    # applied inside the kernel on the f32 accumulator.
    a_bin = jnp.maximum(adj, jnp.eye(n, dtype=adj.dtype)).astype(jnp.int8)
    a_bin = jnp.pad(a_bin, ((0, n_pad - n), (0, n_pad - n)))
    deg = jnp.sum(adj, axis=1, keepdims=True)              # in-degree per node
    invdeg = (1.0 / (deg + 1.0)).astype(jnp.float32)
    invdeg = jnp.pad(invdeg, ((0, n_pad - n), (0, 0)), constant_values=1.0)

    # ---- features: pad rows to N_pad and feature dim to a lane multiple ----
    f_in = x.shape[1]
    f_in_pad = _round_up(f_in, _LANE)
    h = jnp.pad(x, ((0, n_pad - n), (0, f_in_pad - f_in))).astype(jnp.bfloat16)

    n_layers = len(params)
    for l, (w, b) in enumerate(params):
        fo, fi = w.shape
        fi_pad = _round_up(fi, _LANE)
        fo_pad = _round_up(fo, _LANE)
        assert fi_pad == h.shape[1]
        w_pad = jnp.pad(w, ((0, fo_pad - fo), (0, fi_pad - fi))).astype(jnp.float32)
        b_pad = jnp.pad(b, (0, fo_pad - fo)).astype(jnp.float32)
        is_last = (l == n_layers - 1)
        h = sage_conv_gcn(a_bin, invdeg, h, w_pad, b_pad,
                          apply_relu=not is_last,
                          out_dtype=jnp.float32 if is_last else jnp.bfloat16,
                          tile_n=tile_n, tile_k=tile_k, tile_lin=tile_lin,
                          force_stream=force_stream)
    # slice off node padding and feature padding
    return h[:n, :params[-1][0].shape[0]]


if __name__ == "__main__":
    # Small, deterministic example shapes (exercise both layer paths + padding).
    N = 48            # number of nodes (pads to 256 -> 2 row tiles of 128)
    IN_FEATS = 160    # pads to 256  -> project-first path on layer 0
    N_HIDDEN = 32     # pads to 128  -> fused agg+proj path on layer 1
    N_CLASSES = 8
    N_LAYERS = 2      # module builds (in->hidden), (hidden->hidden)

    key = jax.random.PRNGKey(0)
    k_x, k_adj, k_p = jax.random.split(key, 3)

    # node features: [N, IN_FEATS]
    x = jax.random.normal(k_x, (N, IN_FEATS), jnp.float32)

    # deterministic random dense binary adjacency (edge j -> i), no self loops
    adj = (jax.random.uniform(k_adj, (N, N)) < 0.3).astype(jnp.float32)
    adj = adj * (1.0 - jnp.eye(N, dtype=jnp.float32))

    params = init_sage_params(k_p, IN_FEATS, N_HIDDEN, N_CLASSES, N_LAYERS)

    # run both the VMEM-resident-h path (default at this size) and the
    # K-slab streaming fallback, so both code paths are validated.
    out = jax.block_until_ready(sage_forward(adj, x, params))
    out_stream = jax.block_until_ready(
        sage_forward(adj, x, params, force_stream=True))

    # reference check in plain JAX f32 (same math as DGL SAGEConv 'gcn')
    h_ref = x
    for l, (w, b) in enumerate(params):
        deg = jnp.sum(adj, axis=1, keepdims=True)
        agg = (adj @ h_ref + h_ref) / (deg + 1.0)
        h_ref = agg @ w.T + b
        if l != len(params) - 1:
            h_ref = jnp.maximum(h_ref, 0.0)

    assert out.shape == h_ref.shape, (out.shape, h_ref.shape)
    max_err = float(jnp.max(jnp.abs(out - h_ref)))
    assert jnp.allclose(out, h_ref, atol=5e-2, rtol=5e-2), max_err
    max_err_s = float(jnp.max(jnp.abs(out_stream - h_ref)))
    assert jnp.allclose(out_stream, h_ref, atol=5e-2, rtol=5e-2), max_err_s

    print("KERNEL_OK")
</pallas_src>

<mosaic_0001>
module attributes {stable_mosaic.version = 11 : i64} {
  func.func @_linear_kernel(%arg0: i32, %arg1: memref<128x256xbf16, #tpu.memory_space<vmem>>, %arg2: memref<256x128xbf16, #tpu.memory_space<vmem>>, %arg3: memref<128x128xbf16, #tpu.memory_space<vmem>>) attributes {dimension_semantics = [#tpu.dimension_semantics<parallel>], iteration_bounds = array<i64: 2>, scalar_prefetch = 0 : i64, scratch_operands = 0 : i64, tpu.core_type = #tpu.core_type<tc>, window_params = [{transform_indices = @transform_0, window_bounds = array<i64: 128, 256>}, {pipeline_mode = #tpu.pipeline_mode<synchronous>, transform_indices = @transform_1, window_bounds = array<i64: 256, 128>}, {transform_indices = @transform_2, window_bounds = array<i64: 128, 128>}]} {
    %c0 = arith.constant 0 : index
    %c0_0 = arith.constant 0 : index
    %0 = vector.load %arg1[%c0, %c0_0] : memref<128x256xbf16, #tpu.memory_space<vmem>>, vector<128x256xbf16>
    %c0_1 = arith.constant 0 : index
    %c0_2 = arith.constant 0 : index
    %1 = vector.load %arg2[%c0_1, %c0_2] : memref<256x128xbf16, #tpu.memory_space<vmem>>, vector<256x128xbf16>
    %cst = arith.constant dense<0.000000e+00> : vector<128x128xf32>
    %2 = tpu.matmul %0, %1, %cst {dimension_numbers = #tpu.dot_dimension_numbers<[1], [0], [0], [1], [0, 0, 1, 1], [], []>} : vector<128x256xbf16>, vector<256x128xbf16>, vector<128x128xf32> -> vector<128x128xf32>
    %3 = arith.truncf %2 : vector<128x128xf32> to vector<128x128xbf16>
    %c0_3 = arith.constant 0 : index
    %c0_4 = arith.constant 0 : index
    %4 = vector.load %arg3[%c0_3, %c0_4] : memref<128x128xbf16, #tpu.memory_space<vmem>>, vector<128x128xbf16>
    tpu.vector_store %arg3[%c0_3, %c0_4], %3 {strides = array<i32>} : memref<128x128xbf16, #tpu.memory_space<vmem>>, vector<128x128xbf16>,
    return
  }
  func.func @transform_0(%arg0: i32) -> (i32, i32) {
    %c0_i32 = arith.constant 0 : i32
    %c0_i32_0 = arith.constant 0 : i32
    return %arg0, %c0_i32 : i32, i32
  }
  func.func @transform_1(%arg0: i32) -> (i32, i32) {
    %c0_i32 = arith.constant 0 : i32
    %c0_i32_0 = arith.constant 0 : i32
    %c0_i32_1 = arith.constant 0 : i32
    return %c0_i32, %c0_i32_0 : i32, i32
  }
  func.func @transform_2(%arg0: i32) -> (i32, i32) {
    %c0_i32 = arith.constant 0 : i32
    %c0_i32_0 = arith.constant 0 : i32
    return %arg0, %c0_i32 : i32, i32
  }
}

</mosaic_0001>

<bundles_post_ra>
// kernel: tpu_custom_call.1
= control target key start
LH: loop header
LB: loop body
LE: loop exit
PB: predicated region body
PF: predicated region fallthrough
CT: control target
= control target key end

     0   :  { %7 = vsyncpa [#allocation3], 0  ;;  %s1348_s0 = inlined_call_operand.hbm [shape: bf16[256,256], index: 0, kind: input, shape index: {}]   ;;  %s1349_s1 = inlined_call_operand.hbm [shape: bf16[256,128], index: 1, kind: input, shape index: {}]   ;;  %s1350_s2 = inlined_call_operand.hbm [shape: bf16[256,128], index: 2, kind: output, shape index: {}]  }
   0x1   :  { %9 = vsyncpa [#allocation3 + $0x1], 0 }
   0x2   :  { %10 = vsyncpa [#allocation6], 0 }
   0x3   :  { %11 = vsyncpa [#allocation4], 0 }
   0x4   :  { %13 = vsyncpa [#allocation4 + $0x1], 0  ;;  %s1141_s9 = smov 0   ;;  %s1143_s10 = smov 0  }
   0x5   :  { %s1145_s11 = smov 0   ;;  %s1147_s12 = smov 0  }
   0x6 LB: > { %s1162_s13 = sadd.s32 4294967295, %s1115_s12   ;;  %s679_s14 = sadd.s32 4294967294, %s1115_s12   ;;  %s1115_s12 = sphi %s1147_s12, %s1372_s12   ;;  %s1111_s11 = sphi %s1145_s11, %s1371_s11   ;;  %s1107_s10 = sphi %s1143_s10, %s1370_s10   ;;  %s1103_s9 = sphi %s1141_s9, %s1369_s9  }
   0x7   : > { %p39_p0 = scmp.ne.s32.totalorder %s1107_s10, %s1103_s9  ;;  %p1351_p1 = scmp.eq.s32.totalorder %s1162_s13, 0 }
   0x8   : > { %p90_p3 = scmp.eq.s32.totalorder %s679_s14, 1  ;;  %p680_p5 = scmp.ge.s32.totalorder %s1115_s12, 1 }
   0x9   : > { %p1171_p4 = por %p1351_p1, %p39_p0  ;;  %p97_p7 = scmp.lt.s32.totalorder %s1115_s12, 3 }
   0xa   : > { %p1176_p6 = por %p90_p3, %p39_p0  ;;  %s1117_s18 = smov [#allocation5]  }
   0xb   : > { %s1355_s15 = scalar_select %p1171_p4, 1, 0 }
   0xc   : > { %s1356_s16 = scalar_select %p1176_p6, 1, 0 }
   0xd   : > { %p1181_p8 = pnand %p680_p5, %p97_p7  ;;  %s109_s19 = sshll.u32 %s1117_s18, 4  ;;  %s110_s19 = int_to_ptr.vmem [resolvable:$true] %s109_s19 }
   0xe   : > { %s1195_s21 = sadd.s32 1, %s1115_s12   ;;  %s26_s22 = sadd.s32 1, %s1111_s11 }
   0xf   : > { %s1357_s17 = scalar_select %p1181_p8, 1, 0 }
  0x10   : > { %p898_p9 = pneg %p1181_p8  ;;  %s23_s23 = ssub.s32 %s1115_s12, %s1195_s21 }
  0x11   : > { %s1004_s24 = scalar_lea.vmem %s110_s19, 2048  ;;  %p1012_p5 = scmp.lt.s32.totalorder %s110_s19, %s110_s19 }
  0x12   : > { %p1190_p11 = pnand %p898_p9, %p1351_p1  ;;  %p1005_p13 = scmp.ne.s32.totalorder %s110_s19, %s1004_s24 }
  0x13   : > { %p1013_p7 = scmp.lt.s32.totalorder %s1004_s24, %s1004_s24 }
  0x14   : > { %p995_p12 = pneg %p1190_p11 }
  0x15   : > { %p1014_p10 = por %p1013_p7, %p1012_p5 }
  0x16   : > { %p1007_p0 = pnand %p1005_p13, %p995_p12 }
  0x18   : > { %p1008_p3 = pneg %p1007_p0 }
  0x1a   : > { %p1015_p2 = pnand %p1014_p10, %p1008_p3 }
  0x1c   : > { %1018 = shalt.err (!%p1015_p2)
}
  0x1d   : > { %s1118_s25 = smov 64   ;;  %s1119_s26 = smov 4  }
  0x1e   : > { %901 = dma.hbm_to_vmem [thread:$0]  (!%p1190_p11), %s1349_s1, 2048, %s110_s19, [#allocation6], %s1118_s25, %s1118_s25, %s1119_s26  }
  0x1f   : > { %p24_p9 = scmp.eq.s32.totalorder %s23_s23, 0  ;;  %p33_p12 = scmp.ne.s32.totalorder %s1111_s11, %s1107_s10 }
  0x20   : > { %p34_p10 = scmp.eq.s32.totalorder %s1115_s12, 0  ;;  %p911_p2 = scmp.lt.s32.totalorder %s1115_s12, 2 }
  0x21   : > { %s1212_s29 = scalar_select %p24_p9, %s1111_s11, %s26_s22  }
  0x22   : > { %p35_p13 = por %p34_p10, %p33_p12  ;;  %p1359_p0 = scmp.eq.s32.totalorder %s1162_s13, 1 }
  0x23   : > { %s123_s3 = sand.u32 1, %s1111_s11   ;;  %s745_s4 = sshll.u32 %s1115_s12, 11 }
  0x24   : > { %p1216_p3 = por %p1359_p0, %p33_p12  ;;  %s683_s5 = sshll.u32 %s123_s3, 7 }
  0x25   : > { %s1225_s8 = scalar_lea.hbm %s1348_s0, %s745_s4  ;;  %s127_s14 = scalar_lea.vmem [#allocation2], %s683_s5 }
  0x26   : > { %s1360_s30 = scalar_select %p1216_p3, 1, 0 }
  0x27   : > { %s135_s18 = sshll.u32 %s127_s14, 4  ;;  %p1227_p11 = pnand %p911_p2, %p35_p13  ;;  %s1231_s18 = int_to_ptr.vmem [resolvable:$true] %s135_s18 }
  0x28   : > { %s1233_s20 = scalar_lea.sflag [#allocation3], %s123_s3  ;;  %s1019_s22 = scalar_lea.hbm %s1225_s8, 2048 }
  0x29   : > { %p1020_p5 = scmp.ne.s32.totalorder %s1225_s8, %s1019_s22  ;;  %p1021_p7 = pneg %p1227_p11 }
  0x2a   : > { %s1024_s25 = scalar_lea.hbm %s1348_s0, 4096  ;;  %p1025_p10 = scmp.lt.s32.totalorder %s1225_s8, %s1348_s0 }
  0x2b   : > { %p1022_p9 = pnand %p1021_p7, %p1020_p5  ;;  %p1026_p2 = scmp.lt.s32.totalorder %s1024_s25, %s1019_s22 }
  0x2d   : > { %p1023_p12 = pneg %p1022_p9  ;;  %p1027_p13 = por %p1026_p2, %p1025_p10 }
  0x2f   : > { %p1028_p0 = pnand %p1027_p13, %p1023_p12 }
  0x31   : > { %1031 = shalt.err (!%p1028_p0)
}
  0x32   : > { %s1032_s28 = scalar_lea.vmem %s1231_s18, 2048  ;;  %s1120_s3 = smov [#allocation2]  }
  0x33   : > { %p1033_p1 = scmp.ne.s32.totalorder %s1231_s18, %s1032_s28  ;;  %s1037_s4 = sshll.u32 %s1120_s3, 4  ;;  %s1038_s4 = int_to_ptr.vmem [resolvable:$false] %s1037_s4 }
  0x34   : > { %s1039_s5 = scalar_lea.vmem %s1038_s4, 4096  ;;  %p1040_p9 = scmp.lt.s32.totalorder %s1231_s18, %s1038_s4 }
  0x35   : > { %p1035_p6 = pnand %p1033_p1, %p1021_p7  ;;  %p1041_p3 = scmp.lt.s32.totalorder %s1039_s5, %s1032_s28 }
  0x37   : > { %p1036_p5 = pneg %p1035_p6  ;;  %p1042_p4 = por %p1041_p3, %p1040_p9 }
  0x39   : > { %p1043_p8 = pnand %p1042_p4, %p1036_p5 }
  0x3b   : > { %1046 = shalt.err (!%p1043_p8)
}
  0x3c   : > { %s1121_s6 = smov 128   ;;  %s1122_s7 = smov 8  }
  0x3d   : > { %905 = dma.hbm_to_vmem [thread:$0]  (!%p1227_p11), %s1225_s8, 2048, %s1231_s18, %s1233_s20, %s1121_s6, %s1121_s6, %s1122_s7  }
  0x3e   : > { %p1362_p1 = scmp.ne.s32.totalorder %s1357_s17, 0 }
  0x3f   : > { %s1257_s14 = sand.u32 (!%p1362_p1), 1, %s1107_s10   ;;  %p1363_p4 = scmp.ne.s32.totalorder (!%p1362_p1), %s1355_s15, 0 }
  0x40   : > { %147 = sbr.rel (%p1362_p1) target bundleno = 347 (0x15b), region = 28  ;;  %s688_s22 = sshll.u32 (!%p1362_p1), %s1257_s14, 7 }
  0x41   : > { %s150_s23 = scalar_lea.sflag (!%p1362_p1), [#allocation3], %s1257_s14  ;;  %s1261_s24 = scalar_lea.vmem (!%p1362_p1), [#allocation2], %s688_s22 }
  0x45   : > { %1090 = dma.done.wait (%p1363_p4), %s150_s23, 2048  }
  0x46   : > { %1092 = vsyncadd (%p1363_p4), %s150_s23, 4294965248  ;;  %p1364_p6 = scmp.eq.s32.totalorder %s1162_s13, 0 }
  0x48   : > { %1094 = dma.done.wait (%p1364_p6), [#allocation6], 2048   ;;  %p1365_p8 = pmov %p1364_p6 }
  0x49   : > { %v953_v0 = vld [vmem:[#allocation5 + $0x78] sm:$0xff]   ;;  %v955_v2 = vld [vmem:[#allocation5 + $0x70] sm:$0xff]   ;;  %v957_v4 = vld [vmem:[#allocation5 + $0x68] sm:$0xff]   ;;  %s690_s15 = sshll.u32 %s1257_s14, 6  ;;  %s762_s18 = sshll.u32 %s1162_s13, 10 }
  0x4a   : > { %1096 = vsyncadd (%p1365_p8), [#allocation6], 4294965248  ;;  %v954_v1 = vld [vmem:[#allocation5 + $0x38] sm:$0xff]   ;;  %810 = vmatprep.subr.bf16.mxu0 %v953_v0  ;;  %874 = vmatprep.subr.bf16.mxu1 %v953_v0  ;;  %v956_v3 = vld [vmem:[#allocation5 + $0x30] sm:$0xff]   ;;  %s1288_s17 = scalar_lea.vmem [#allocation7], %s690_s15  ;;  %s1303_s25 = scalar_lea.hbm %s1350_s2, %s762_s18 }
  0x4b   : > { %811 = vmatpush3.bf16.msra.mxu0 %v954_v1  ;;  %882 = vmatpush3.bf16.msra.mxu1 %v954_v1  ;;  %v958_v5 = vld [vmem:[#allocation5 + $0x28] sm:$0xff]   ;;  %v959_v6 = vld [vmem:[#allocation5 + $0x60] sm:$0xff]   ;;  %v961_v8 = vld [vmem:[#allocation5 + $0x58] sm:$0xff]   ;;  %s596_s8 = sshll.u32 %s1288_s17, 4  ;;  %s583_s13 = scalar_lea.sflag [#allocation4], %s1257_s14  ;;  %s1298_s8 = int_to_ptr.vmem [resolvable:$true] %s596_s8 }
  0x4c   : > { %812 = vmatprep.subr.bf16.mxu0 %v955_v2  ;;  %875 = vmatprep.subr.bf16.mxu1 %v955_v2  ;;  %v960_v7 = vld [vmem:[#allocation5 + $0x20] sm:$0xff]   ;;  %v962_v9 = vld [vmem:[#allocation5 + $0x18] sm:$0xff]   ;;  %v963_v10 = vld [vmem:[#allocation5 + $0x50] sm:$0xff]   ;;  %s1047_s26 = scalar_lea.vmem %s1298_s8, 1024  ;;  %p1366_p11 = scmp.ne.s32.totalorder %s1360_s30, 0 }
  0x4d   : > { %v971_v11 = vld [vmem:[%s1261_s24 + $0x4] ss:$8 sps:$4 sm:$0xff]   ;;  %v964_v13 = vld [vmem:[#allocation5 + $0x10] sm:$0xff]   ;;  %v969_v18 = vld [vmem:[%s1261_s24] ss:$8 sps:$4 sm:$0xff]   ;;  %p1048_p3 = scmp.ne.s32.totalorder %s1298_s8, %s1047_s26  ;;  %s1123_s27 = smov [#allocation7]  }
  0x4e   : > { %v974_v12 = vld [vmem:[%s1261_s24 + $0x44] ss:$8 sps:$4 sm:$0xff]   ;;  %437 = vmatprep.mubr.bf16.mxu0 %v971_v11  ;;  %v972_v19 = vld [vmem:[%s1261_s24 + $0x40] ss:$8 sps:$4 sm:$0xff]   ;;  %v975_v20 = vld [vmem:[%s1261_s24 + $0x14] ss:$8 sps:$4 sm:$0xff]  }
  0x4f   : > { %813 = vmatpush3.bf16.msra.mxu0 %v956_v3  ;;  %883 = vmatpush3.bf16.msra.mxu1 %v956_v3  ;;  %v965_v14 = vld [vmem:[#allocation5 + $0x48] sm:$0xff]   ;;  %v967_v16 = vld [vmem:[#allocation5 + $0x40] sm:$0xff]   ;;  %v977_v21 = vld [vmem:[%s1261_s24 + $0x54] ss:$8 sps:$4 sm:$0xff]   ;;  %p1049_p7 = pnand %p1048_p3, %p1366_p11  ;;  %s1051_s28 = sshll.u32 %s1123_s27, 4  ;;  %s1052_s28 = int_to_ptr.vmem [resolvable:$false] %s1051_s28 }
  0x50   : > { %814 = vmatprep.subr.bf16.mxu0 %v957_v4  ;;  %876 = vmatprep.subr.bf16.mxu1 %v957_v4  ;;  %v966_v15 = vld [vmem:[#allocation5 + $0x8] sm:$0xff]   ;;  %v968_v17 = vld [vmem:[#allocation5] sm:$0xff]   ;;  %v979_v22 = vld [vmem:[%s1261_s24 + $0x10] ss:$8 sps:$4 sm:$0xff]   ;;  %s1053_s3 = scalar_lea.vmem %s1052_s28, 2048  ;;  %p1054_p10 = scmp.lt.s32.totalorder %s1298_s8, %s1052_s28 }
  0x51   : > { %469 = vmatprep.mubr.bf16.mxu1 %v974_v12  ;;  %v980_v23 = vld [vmem:[%s1261_s24 + $0x50] ss:$8 sps:$4 sm:$0xff]   ;;  %v981_v24 = vld [vmem:[%s1261_s24 + $0x24] ss:$8 sps:$4 sm:$0xff]   ;;  %v985_v26 = vld [vmem:[%s1261_s24 + $0x20] ss:$8 sps:$4 sm:$0xff]   ;;  %p1050_p12 = pneg %p1049_p7  ;;  %p1055_p2 = scmp.lt.s32.totalorder %s1053_s3, %s1047_s26 }
  0x52   : > { %v983_v25 = vld [vmem:[%s1261_s24 + $0x64] ss:$8 sps:$4 sm:$0xff]   ;;  %v986_v27 = vld [vmem:[%s1261_s24 + $0x60] ss:$8 sps:$4 sm:$0xff]   ;;  %v987_v28 = vld [vmem:[%s1261_s24 + $0x34] ss:$8 sps:$4 sm:$0xff]  }
  0x53   : > { %815 = vmatpush3.bf16.msra.mxu0 %v958_v5  ;;  %884 = vmatpush3.bf16.msra.mxu1 %v958_v5  ;;  %v989_v29 = vld [vmem:[%s1261_s24 + $0x74] ss:$8 sps:$4 sm:$0xff]   ;;  %v991_v30 = vld [vmem:[%s1261_s24 + $0x30] ss:$8 sps:$4 sm:$0xff]   ;;  %p1056_p13 = por %p1055_p2, %p1054_p10 }
  0x54   : > { %816 = vmatprep.subr.bf16.mxu0 %v959_v6  ;;  %877 = vmatprep.subr.bf16.mxu1 %v959_v6  ;;  %v992_v31 = vld [vmem:[%s1261_s24 + $0x70] ss:$8 sps:$4 sm:$0xff]  }
  0x55   : > { %p1057_p0 = pnand %p1056_p13, %p1050_p12 }
  0x57   : > { %817 = vmatpush3.bf16.msra.mxu0 %v960_v7  ;;  %885 = vmatpush3.bf16.msra.mxu1 %v960_v7 }
  0x58   : > { %818 = vmatprep.subr.bf16.mxu0 %v961_v8  ;;  %878 = vmatprep.subr.bf16.mxu1 %v961_v8 }
  0x5b   : > { %819 = vmatpush3.bf16.msra.mxu0 %v962_v9  ;;  %886 = vmatpush3.bf16.msra.mxu1 %v962_v9 }
  0x5c   : > { %820 = vmatprep.subr.bf16.mxu0 %v963_v10  ;;  %879 = vmatprep.subr.bf16.mxu1 %v963_v10 }
  0x5f   : > { %821 = vmatpush3.bf16.msra.mxu0 %v964_v13  ;;  %887 = vmatpush3.bf16.msra.mxu1 %v964_v13 }
  0x60   : > { %822 = vmatprep.subr.bf16.mxu0 %v965_v14  ;;  %880 = vmatprep.subr.bf16.mxu1 %v965_v14 }
  0x63   : > { %823 = vmatpush3.bf16.msra.mxu0 %v966_v15  ;;  %888 = vmatpush3.bf16.msra.mxu1 %v966_v15 }
  0x64   : > { %824 = vmatprep.subr.bf16.mxu0 %v967_v16  ;;  %881 = vmatprep.subr.bf16.mxu1 %v967_v16 }
  0x67   : > { %825 = vmatpush3.bf16.msra.mxu0 %v968_v17  ;;  %889 = vmatpush3.bf16.msra.mxu1 %v968_v17 }
  0x6a   : > { %438 = vmatmul.mubr.bf16.vlgmr.msra.gmra.mxu0 %v969_v18  ;;  %470 = vmatmul.mubr.bf16.vlgmr.msra.gmra.mxu1 %v972_v19 }
  0x6b   : > { %445 = vmatprep.mubr.bf16.mxu0 %v975_v20  ;;  %477 = vmatprep.mubr.bf16.mxu1 %v977_v21 }
  0x72   : > { %446 = vmatmul.mubr.bf16.gmra.mxu0 %v979_v22  ;;  %478 = vmatmul.mubr.bf16.gmra.mxu1 %v980_v23 }
  0x73   : > { %453 = vmatprep.mubr.bf16.mxu0 %v981_v24  ;;  %485 = vmatprep.mubr.bf16.mxu1 %v983_v25 }
  0x7a   : > { %454 = vmatmul.mubr.bf16.gmra.mxu0 %v985_v26  ;;  %486 = vmatmul.mubr.bf16.gmra.mxu1 %v986_v27 }
  0x7b   : > { %461 = vmatprep.mubr.bf16.mxu0 %v987_v28  ;;  %493 = vmatprep.mubr.bf16.mxu1 %v989_v29 }
  0x82   : > { %462 = vmatmul.mubr.bf16.gmra.mxu0 %v991_v30  ;;  %494 = vmatmul.mubr.bf16.gmra.mxu1 %v992_v31 }
 0x12a   : > { %v826_v32 = vpop.f32.mrf.mxu0  ;;  %v850_v33 = vpop.f32.mrf.mxu1 }
 0x12c   : > { %v827_v34 = vpop.f32.mrf.mxu0  ;;  %v851_v35 = vpop.f32.mrf.mxu1 }
 0x12d   : > { %v828_v40 = vadd.f32 %v827_v34, %v826_v32  ;;  %v852_v41 = vadd.f32 %v851_v35, %v850_v33 }
 0x12e   : > { %v829_v36 = vpop.f32.mrf.mxu0  ;;  %v853_v37 = vpop.f32.mrf.mxu1 }
 0x130   : > { %v830_v38 = vpop.f32.mrf.mxu0  ;;  %v854_v39 = vpop.f32.mrf.mxu1 }
 0x131   : > { %v831_v42 = vadd.f32 %v830_v38, %v829_v36  ;;  %v855_v43 = vadd.f32 %v854_v39, %v853_v37 }
 0x132   : > { %v832_v44 = vpop.f32.mrf.mxu0  ;;  %v856_v45 = vpop.f32.mrf.mxu1 }
 0x133   : > { %v766_v46 = vpack.c.bf16 %v831_v42, %v828_v40  ;;  %v786_v47 = vpack.c.bf16 %v855_v43, %v852_v41 }
 0x134   : > { %v833_v48 = vpop.f32.mrf.mxu0  ;;  %v857_v49 = vpop.f32.mrf.mxu1 }
 0x135   : > { %767 = vst [vmem:[%s1288_s17] sm:$0xff] %v766_v46   ;;  %806 = vst [vmem:[%s1288_s17 + $0x20] sm:$0xff] %v786_v47   ;;  %v834_v54 = vadd.f32 %v833_v48, %v832_v44  ;;  %v858_v55 = vadd.f32 %v857_v49, %v856_v45 }
 0x136   : > { %v835_v50 = vpop.f32.mrf.mxu0  ;;  %v859_v51 = vpop.f32.mrf.mxu1 }
 0x138   : > { %v836_v52 = vpop.f32.mrf.mxu0  ;;  %v860_v53 = vpop.f32.mrf.mxu1 }
 0x139   : > { %v837_v56 = vadd.f32 %v836_v52, %v835_v50  ;;  %v861_v57 = vadd.f32 %v860_v53, %v859_v51 }
 0x13a   : > { %v838_v58 = vpop.f32.mrf.mxu0  ;;  %v862_v59 = vpop.f32.mrf.mxu1 }
 0x13b   : > { %v771_v60 = vpack.c.bf16 %v837_v56, %v834_v54  ;;  %v791_v61 = vpack.c.bf16 %v861_v57, %v858_v55 }
 0x13c   : > { %v839_v62 = vpop.f32.mrf.mxu0  ;;  %v863_v63 = vpop.f32.mrf.mxu1 }
 0x13d   : > { %803 = vst [vmem:[%s1288_s17 + $0x8] sm:$0xff] %v771_v60   ;;  %807 = vst [vmem:[%s1288_s17 + $0x28] sm:$0xff] %v791_v61   ;;  %v840_v4 = vadd.f32 %v839_v62, %v838_v58  ;;  %v864_v5 = vadd.f32 %v863_v63, %v862_v59 }
 0x13e   : > { %v841_v0 = vpop.f32.mrf.mxu0  ;;  %v865_v1 = vpop.f32.mrf.mxu1 }
 0x140   : > { %v842_v2 = vpop.f32.mrf.mxu0  ;;  %v866_v3 = vpop.f32.mrf.mxu1 }
 0x141   : > { %v843_v6 = vadd.f32 %v842_v2, %v841_v0  ;;  %v867_v7 = vadd.f32 %v866_v3, %v865_v1 }
 0x142   : > { %v844_v8 = vpop.f32.mrf.mxu0  ;;  %v868_v9 = vpop.f32.mrf.mxu1 }
 0x143   : > { %v776_v10 = vpack.c.bf16 %v843_v6, %v840_v4  ;;  %v796_v11 = vpack.c.bf16 %v867_v7, %v864_v5 }
 0x144   : > { %v845_v12 = vpop.f32.mrf.mxu0  ;;  %v869_v13 = vpop.f32.mrf.mxu1 }
 0x145   : > { %804 = vst [vmem:[%s1288_s17 + $0x10] sm:$0xff] %v776_v10   ;;  %808 = vst [vmem:[%s1288_s17 + $0x30] sm:$0xff] %v796_v11   ;;  %v846_v18 = vadd.f32 %v845_v12, %v844_v8  ;;  %v870_v19 = vadd.f32 %v869_v13, %v868_v9 }
 0x146   : > { %v847_v14 = vpop.f32.mrf.mxu0  ;;  %v871_v15 = vpop.f32.mrf.mxu1 }
 0x148   : > { %v848_v16 = vpop.f32.mrf.mxu0  ;;  %v872_v17 = vpop.f32.mrf.mxu1 }
 0x149   : > { %v849_v20 = vadd.f32 %v848_v16, %v847_v14  ;;  %v873_v21 = vadd.f32 %v872_v17, %v871_v15 }
 0x14b   : > { %v781_v22 = vpack.c.bf16 %v849_v20, %v846_v18  ;;  %v801_v23 = vpack.c.bf16 %v873_v21, %v870_v19 }
 0x14d   : > { %805 = vst [vmem:[%s1288_s17 + $0x18] sm:$0xff] %v781_v22   ;;  %809 = vst [vmem:[%s1288_s17 + $0x38] sm:$0xff] %v801_v23  }
 0x14e   : > { %1060 = shalt.err (!%p1057_p0)
}
 0x14f   : > { %s1061_s4 = scalar_lea.hbm %s1303_s25, 1024  ;;  %s1065_s7 = scalar_lea.hbm %s1350_s2, 2048 }
 0x150   : > { %p1062_p5 = scmp.ne.s32.totalorder %s1303_s25, %s1061_s4  ;;  %p1066_p4 = scmp.lt.s32.totalorder %s1303_s25, %s1350_s2 }
 0x151   : > { %p1067_p6 = scmp.lt.s32.totalorder %s1065_s7, %s1061_s4 }
 0x152   : > { %p1063_p9 = pnand %p1062_p5, %p1366_p11 }
 0x153   : > { %p1068_p8 = por %p1067_p6, %p1066_p4 }
 0x154   : > { %p1064_p1 = pneg %p1063_p9 }
 0x156   : > { %p1069_p3 = pnand %p1068_p8, %p1064_p1 }
 0x158   : > { %1072 = shalt.err (!%p1069_p3)
}
 0x159   : > { %s1124_s24 = smov 64   ;;  %s1125_s15 = smov 4  }
 0x15a   : > { %896 = dma.vmem_to_hbm [thread:$0]  (%p1366_p11), %s1298_s8, 1024, %s1303_s25, %s583_s13, %s1124_s24, %s1124_s24, %s1125_s15  }
 0x15b PF: > { %s611_s17 = sand.u32 1, %s1103_s9   ;;  %p1367_p7 = scmp.ne.s32.totalorder %s1356_s16, 0 }
 0x15c   : > { %p1368_p12 = scmp.ge.s32.totalorder %s1115_s12, 2  ;;  %s612_s18 = scalar_lea.sflag [#allocation4], %s611_s17 }
 0x15e   : > { %p907_p10 = pnand %p1368_p12, %p1367_p7 }
 0x160   : > { %p908_p2 = pneg %p907_p10 }
 0x162   : > { %1098 = dma.done.wait (%p908_p2), %s612_s18, 1024  }
 0x163   : > { %1100 = vsyncadd (%p908_p2), %s612_s18, 4294966272  ;;  %p16_p13 = scmp.ge.s32.totalorder %s1195_s21, 4   ;;  %s1369_s9 = smov %s1107_s10 }
 0x164   : > { %s1370_s10 = smov %s1111_s11  ;;  %s1371_s11 = smov %s1212_s29 }
 0x165   : > { %s1372_s12 = smov %s1195_s21  ;;  %18 = sbr.rel (!%p16_p13) target bundleno = 6 (0x6), region = 77 }
 0x16a   :  { %617 = vsyncpa [#allocation3], 1 }
 0x16b   :  { %619 = vsyncpa [#allocation3 + $0x1], 1 }
 0x16c   :  { %620 = vsyncpa [#allocation6], 1 }
 0x16d   :  { %621 = vsyncpa [#allocation4], 1 }
 0x16e   :  { %623 = vsyncpa [#allocation4 + $0x1], 1 }

</bundles_post_ra>
